<compile_context>
chip_gen: v7x
topology: tpu7x:2x2x1
jax: 0.10.0
libtpu: 0.0.40
codegen_flags: <defaults>
</compile_context>

<pallas_src>
import jax
import jax.numpy as jnp
from jax.experimental import pallas as pl
from jax.experimental.pallas import tpu as pltpu


def _dma_copy_kernel(x_hbm, o_hbm, sem):
    # Single whole-array HBM -> HBM DMA; no VMEM round trip.
    cp = pltpu.make_async_copy(x_hbm, o_hbm, sem)
    cp.start()
    cp.wait()


def _pallas_hbm_copy(x):
    """Identity copy of an array via one HBM->HBM DMA inside a Pallas call."""
    return pl.pallas_call(
        _dma_copy_kernel,
        out_shape=jax.ShapeDtypeStruct(x.shape, x.dtype),
        in_specs=[pl.BlockSpec(memory_space=pl.ANY)],
        out_specs=pl.BlockSpec(memory_space=pl.ANY),
        scratch_shapes=[pltpu.SemaphoreType.DMA],
        compiler_params=pltpu.CompilerParams(has_side_effects=True),
    )(x)


def _normalize_dim(dim, ndim):
    if dim < -(ndim + 1) or dim > ndim:
        raise ValueError(
            f"Dimension out of range (expected to be in range of "
            f"[{-(ndim + 1)}, {ndim}], but got {dim})"
        )
    return dim + ndim + 1 if dim < 0 else dim


def unsqueeze_view(x, dim):
    """Zero-cost (metadata-only) unsqueeze — the preferred path in practice."""
    x = jnp.asarray(x)
    d = _normalize_dim(dim, x.ndim)
    return x.reshape(x.shape[:d] + (1,) + x.shape[d:])


def unsqueeze(x, dim):
    """JAX/Pallas equivalent of torch.Tensor.unsqueeze(dim) (materializing)."""
    x = jnp.asarray(x)
    d = _normalize_dim(dim, x.ndim)
    out_shape = x.shape[:d] + (1,) + x.shape[d:]

    if x.size == 0:
        # Nothing to copy; metadata-only reshape.
        return x.reshape(out_shape)

    src = x.reshape(1) if x.ndim == 0 else x  # give DMA a rank>=1 ref
    y = _pallas_hbm_copy(src)
    return y.reshape(out_shape)


class Unsqueeze:
    """Mirror of the PyTorch module (no parameters)."""

    def __init__(self, *dims):
        self.dims = dims

    def __call__(self, x):
        return unsqueeze(x, *self.dims)

    def __repr__(self):
        return "Unsqueeze({})".format(",".join(str(d) for d in self.dims))


if __name__ == "__main__":
    key = jax.random.PRNGKey(0)
    ok = True

    def check(got, want, tag):
        global ok
        got = jax.block_until_ready(got)
        if got.shape != want.shape or not bool(jnp.array_equal(got, want)):
            ok = False
            print(f"MISMATCH [{tag}]: got {got.shape}, want {want.shape}")

    # Primary demo: NCHW-like float32 input (2, 4, 16, 16).
    x = jax.random.normal(key, (2, 4, 16, 16), dtype=jnp.float32)
    for dim in (0, 1, 2, -1, 4, -5):
        check(Unsqueeze(dim)(x), jnp.expand_dims(x, dim), f"f32 dim={dim}")

    # bf16 input (sub-32-bit dtype through the DMA path).
    xh = x.astype(jnp.bfloat16)
    check(Unsqueeze(-1)(xh), jnp.expand_dims(xh, -1), "bf16 dim=-1")

    # Odd, non-128-aligned shape — works unchanged through the HBM DMA path.
    xo = jax.random.normal(jax.random.PRNGKey(2), (3, 5, 7), dtype=jnp.float32)
    check(Unsqueeze(1)(xo), jnp.expand_dims(xo, 1), "odd dim=1")

    # 0-d input.
    x0 = jnp.asarray(3.5, dtype=jnp.float32)
    check(Unsqueeze(0)(x0), jnp.expand_dims(x0, 0), "scalar dim=0")

    # Larger tensor (still small): 8*4*16*32 f32.
    xb = jax.random.normal(jax.random.PRNGKey(1), (8, 4, 16, 32),
                           dtype=jnp.float32)
    check(unsqueeze(xb, 2), jnp.expand_dims(xb, 2), "large dim=2")
    check(unsqueeze(xb, -1), jnp.expand_dims(xb, -1), "large dim=-1")

    if ok:
        print("KERNEL_OK")
</pallas_src>

<mosaic_0001>
module attributes {stable_mosaic.version = 11 : i64} {
  func.func @_dma_copy_kernel(%arg0: memref<2x4x16x16xf32, #tpu.memory_space<any>>, %arg1: memref<2x4x16x16xf32, #tpu.memory_space<any>>, %arg2: memref<!tpu.dma_semaphore, #tpu.memory_space<semaphore_mem>>) attributes {dimension_semantics = [], scalar_prefetch = 0 : i64, scratch_operands = 1 : i64, tpu.core_type = #tpu.core_type<tc>} {
    tpu.enqueue_dma source(%arg0 : memref<2x4x16x16xf32, #tpu.memory_space<any>>) target(%arg1 : memref<2x4x16x16xf32, #tpu.memory_space<any>>) target_semaphore(%arg2 : memref<!tpu.dma_semaphore, #tpu.memory_space<semaphore_mem>>)
    tpu.wait_dma2 semaphore(%arg2 : memref<!tpu.dma_semaphore, #tpu.memory_space<semaphore_mem>>) src(%arg0 : memref<2x4x16x16xf32, #tpu.memory_space<any>>) dst(%arg1 : memref<2x4x16x16xf32, #tpu.memory_space<any>>)
    return
  }
}

</mosaic_0001>

<bundles_post_ra>
// kernel: tpu_custom_call.1
= control target key start
LH: loop header
LB: loop body
LE: loop exit
PB: predicated region body
PF: predicated region fallthrough
CT: control target
= control target key end

     0   :  { %s36_s6 = smov [#allocation2]   ;;  %s37_s7 = smov [#allocation3]   ;;  %s55_s0 = inlined_call_operand.hbm [shape: f32[2,4,16,16], index: 0, kind: input, shape index: {}]   ;;  %s56_s1 = inlined_call_operand.hbm [shape: f32[2,4,16,16], index: 1, kind: output, shape index: {}]  }
   0x1   :  { %s38_s8 = smov 0  }
   0x2   :  { %18 = dma.general %s55_s0, 2048, %s56_s1, %s36_s6, %s37_s7, [#allocation4], %s38_s8, 0  }
   0x3   :  { %34 = dma.done.wait [#allocation2], 2048 }
   0x4   :  { %35 = vsyncadd [#allocation2], 4294965248 }
   0x5   :  { %24 = vsyncmov [#allocation2] }
   0x8   :  { %s25_s13 = vpop.sfrf %24 }
   0x9   :  { %p30_p0 = scmp.ne.s32.totalorder %s25_s13, 0 }
   0xb   :  { %29 = shalt.err (%p30_p0)  }

</bundles_post_ra>
